<compile_context>
chip_gen: v5e
topology: v5e:2x2
jax: 0.10.0
libtpu: 0.0.40
codegen_flags: <defaults>
</compile_context>

<pallas_src>
import jax
import jax.numpy as jnp
from jax.experimental import pallas as pl
from jax.experimental.pallas import tpu as pltpu

HIDDEN = 32


def _round_up(n, m):
    return (n + m - 1) // m * m


def _mlp_kernel(x_ref, w1_ref, b1_ref, w2_ref, b2_ref, w3_ref, b3_ref, o_ref):
    """One batch tile. x_ref: (TILE_B, D) f32. All intermediates feature-major."""
    cdt = w1_ref.dtype                                       # compute dtype
    x = x_ref[...].astype(cdt)                               # (TILE_B, D)

    # fc1: h1[o, b] = sum_d W1[o, d] * x[b, d]  ->  (32, TILE_B)   (NT matmul)
    h1 = jax.lax.dot_general(
        w1_ref[...], x, (((1,), (1,)), ((), ())),
        preferred_element_type=jnp.float32)
    h1 = jnp.maximum(h1 + b1_ref[...], 0.0)                  # f32 bias + relu

    # fc2: (32, 32) @ (32, TILE_B) -> (32, TILE_B)
    h2 = jnp.dot(w2_ref[...], h1.astype(cdt),
                 preferred_element_type=jnp.float32)
    h2 = jnp.maximum(h2 + b2_ref[...], 0.0)

    # fc3 head: (1, 32) @ (32, TILE_B) -> (1, TILE_B), lane-dense output block.
    logits = jnp.dot(w3_ref[...], h2.astype(cdt),
                     preferred_element_type=jnp.float32)
    logits = logits + b3_ref[...]
    o_ref[...] = jax.nn.sigmoid(logits).astype(o_ref.dtype)


def meta_model_forward(x, params, *, tile_b=4096, use_bf16=True):
    """x: (B, D) float32. params: torch-layout weights (out, in), biases (out, 1).

    Returns sigmoid(fc3(relu(fc2(relu(fc1(x)))))) with shape (B, 1) float32.
    """
    B, D = x.shape
    H = params["w1"].shape[0]

    # Batch tile: multiple of 256 (lane-dense output blocks, happy sublane
    # packing), large enough to amortize per-step overhead, capped so the
    # double-buffered f32 x tile stays well inside the scoped VMEM limit,
    # and no larger than the padded batch itself.
    vmem_cap = max(256, ((4 << 20) // (4 * D)) // 256 * 256)   # ~4 MiB per x buffer
    tile_b = max(256, min(_round_up(tile_b, 256), _round_up(B, 256), vmem_cap))
    b_pad = _round_up(B, tile_b)
    grid = (b_pad // tile_b,)

    wdt = jnp.bfloat16 if use_bf16 else jnp.float32
    xp = x if b_pad == B else jnp.pad(x, ((0, b_pad - B), (0, 0)))
    xp = xp.astype(jnp.float32)          # x stream stays f32 in HBM
    w1 = params["w1"].astype(wdt)
    w2 = params["w2"].astype(wdt)
    w3 = params["w3"].astype(wdt)
    b1 = params["b1"].astype(jnp.float32)
    b2 = params["b2"].astype(jnp.float32)
    b3 = params["b3"].astype(jnp.float32)

    resident = lambda i: (0, 0)     # weights/biases: same block every grid step

    cost = pl.CostEstimate(
        flops=2 * b_pad * (D * H + H * H + H),
        transcendentals=b_pad,                           # sigmoid
        bytes_accessed=(xp.size * xp.dtype.itemsize + b_pad * 4
                        + sum(a.size * a.dtype.itemsize
                              for a in (w1, b1, w2, b2, w3, b3))))

    out = pl.pallas_call(
        _mlp_kernel,
        out_shape=jax.ShapeDtypeStruct((1, b_pad), jnp.float32),
        grid=grid,
        in_specs=[
            pl.BlockSpec((tile_b, D), lambda i: (i, 0)),   # x: batch-tiled
            pl.BlockSpec((H, D), resident),                # w1 (out, in)
            pl.BlockSpec((H, 1), resident),                # b1
            pl.BlockSpec((H, H), resident),                # w2
            pl.BlockSpec((H, 1), resident),                # b2
            pl.BlockSpec((1, H), resident),                # w3
            pl.BlockSpec((1, 1), resident),                # b3
        ],
        out_specs=pl.BlockSpec((1, tile_b), lambda i: (0, i)),
        compiler_params=pltpu.CompilerParams(
            dimension_semantics=("parallel",)),
        cost_estimate=cost,
    )(xp, w1, b1, w2, b2, w3, b3)

    # (1, B_pad) lane-dense slab -> caller-visible (B, 1). Reshape+slice only.
    return out.reshape(b_pad, 1)[:B]


def init_params(key, input_dim, hidden=HIDDEN):
    """torch.nn.Linear-style init; weights kept in torch layout (out, in)."""
    ks = jax.random.split(key, 6)

    def lin(kw, kb, fan_in, fan_out):
        bound = float(fan_in) ** -0.5
        w = jax.random.uniform(kw, (fan_out, fan_in), jnp.float32, -bound, bound)
        b = jax.random.uniform(kb, (fan_out, 1), jnp.float32, -bound, bound)
        return w, b

    w1, b1 = lin(ks[0], ks[1], input_dim, hidden)
    w2, b2 = lin(ks[2], ks[3], hidden, hidden)
    w3, b3 = lin(ks[4], ks[5], hidden, 1)
    return dict(w1=w1, b1=b1, w2=w2, b2=b2, w3=w3, b3=b3)


def meta_model_reference(x, p):
    hp = dict(precision=jax.lax.Precision.HIGHEST)
    h1 = jnp.maximum(jnp.dot(x, p["w1"].T, **hp) + p["b1"].T, 0.0)
    h2 = jnp.maximum(jnp.dot(h1, p["w2"].T, **hp) + p["b2"].T, 0.0)
    return jax.nn.sigmoid(jnp.dot(h2, p["w3"].T, **hp) + p["b3"].T)


if __name__ == "__main__":
    # TODO(synk): Adam optimizer / training step has no forward-pass Pallas
    # equivalent; only the forward is implemented.
    key = jax.random.PRNGKey(0)
    k_x, k_p = jax.random.split(key)

    batch, input_dim = 8, 16
    x = jax.random.normal(k_x, (batch, input_dim), dtype=jnp.float32)
    params = init_params(k_p, input_dim)

    ref = meta_model_reference(x, params)

    # Exact-precision path (f32 matmul inputs).
    out_f32 = jax.block_until_ready(meta_model_forward(x, params, use_bf16=False))
    assert out_f32.shape == (batch, 1)
    assert jnp.allclose(out_f32, ref, atol=1e-2), "f32 path mismatch vs reference"

    # Default fast path: bf16 weights, f32 x stream, f32 accumulation.
    out_bf16 = jax.block_until_ready(meta_model_forward(x, params))
    assert out_bf16.shape == (batch, 1)
    assert jnp.allclose(out_bf16, ref, atol=2e-2), "bf16 path mismatch vs reference"

    print("KERNEL_OK")
</pallas_src>

<mosaic_0001>
module attributes {stable_mosaic.version = 11 : i64} {
  func.func @_mlp_kernel(%arg0: i32, %arg1: memref<256x16xf32, #tpu.memory_space<vmem>>, %arg2: memref<32x16xf32, #tpu.memory_space<vmem>>, %arg3: memref<32x1xf32, #tpu.memory_space<vmem>>, %arg4: memref<32x32xf32, #tpu.memory_space<vmem>>, %arg5: memref<32x1xf32, #tpu.memory_space<vmem>>, %arg6: memref<1x32xf32, #tpu.memory_space<vmem>>, %arg7: memref<1x1xf32, #tpu.memory_space<vmem>>, %arg8: memref<1x256xf32, #tpu.memory_space<vmem>>) attributes {dimension_semantics = [#tpu.dimension_semantics<parallel>], iteration_bounds = array<i64: 1>, scalar_prefetch = 0 : i64, scratch_operands = 0 : i64, tpu.core_type = #tpu.core_type<tc>, window_params = [{transform_indices = @transform_0, window_bounds = array<i64: 256, 16>}, {pipeline_mode = #tpu.pipeline_mode<synchronous>, transform_indices = @transform_1, window_bounds = array<i64: 32, 16>}, {pipeline_mode = #tpu.pipeline_mode<synchronous>, transform_indices = @transform_2, window_bounds = array<i64: 32, 1>}, {pipeline_mode = #tpu.pipeline_mode<synchronous>, transform_indices = @transform_3, window_bounds = array<i64: 32, 32>}, {pipeline_mode = #tpu.pipeline_mode<synchronous>, transform_indices = @transform_4, window_bounds = array<i64: 32, 1>}, {pipeline_mode = #tpu.pipeline_mode<synchronous>, transform_indices = @transform_5, window_bounds = array<i64: 1, 32>}, {pipeline_mode = #tpu.pipeline_mode<synchronous>, transform_indices = @transform_6, window_bounds = array<i64: 1, 1>}, {transform_indices = @transform_7, window_bounds = array<i64: 1, 256>}]} {
    %c0 = arith.constant 0 : index
    %c0_0 = arith.constant 0 : index
    %0 = vector.load %arg1[%c0, %c0_0] : memref<256x16xf32, #tpu.memory_space<vmem>>, vector<256x16xf32>
    %c0_1 = arith.constant 0 : index
    %c0_2 = arith.constant 0 : index
    %1 = vector.load %arg2[%c0_1, %c0_2] : memref<32x16xf32, #tpu.memory_space<vmem>>, vector<32x16xf32>
    %cst = arith.constant dense<0.000000e+00> : vector<32x256xf32>
    %2 = tpu.matmul %1, %0, %cst {dimension_numbers = #tpu.dot_dimension_numbers<[1], [1], [0], [0], [0, 0, 1, 0], [], []>} : vector<32x16xf32>, vector<256x16xf32>, vector<32x256xf32> -> vector<32x256xf32>
    %c0_3 = arith.constant 0 : index
    %c0_4 = arith.constant 0 : index
    %3 = vector.load %arg3[%c0_3, %c0_4] : memref<32x1xf32, #tpu.memory_space<vmem>>, vector<32x1xf32>
    %4 = vector.broadcast %3 : vector<32x1xf32> to vector<32x256xf32>
    %5 = arith.addf %2, %4 : vector<32x256xf32>
    %cst_5 = arith.constant 0.000000e+00 : f32
    %6 = vector.broadcast %cst_5 : f32 to vector<32x256xf32>
    %7 = arith.maximumf %5, %6 : vector<32x256xf32>
    %c0_6 = arith.constant 0 : index
    %c0_7 = arith.constant 0 : index
    %8 = vector.load %arg4[%c0_6, %c0_7] : memref<32x32xf32, #tpu.memory_space<vmem>>, vector<32x32xf32>
    %cst_8 = arith.constant dense<0.000000e+00> : vector<32x256xf32>
    %9 = tpu.matmul %8, %7, %cst_8 {dimension_numbers = #tpu.dot_dimension_numbers<[1], [0], [0], [1], [0, 0, 1, 1], [], []>} : vector<32x32xf32>, vector<32x256xf32>, vector<32x256xf32> -> vector<32x256xf32>
    %c0_9 = arith.constant 0 : index
    %c0_10 = arith.constant 0 : index
    %10 = vector.load %arg5[%c0_9, %c0_10] : memref<32x1xf32, #tpu.memory_space<vmem>>, vector<32x1xf32>
    %11 = vector.broadcast %10 : vector<32x1xf32> to vector<32x256xf32>
    %12 = arith.addf %9, %11 : vector<32x256xf32>
    %cst_11 = arith.constant 0.000000e+00 : f32
    %13 = vector.broadcast %cst_11 : f32 to vector<32x256xf32>
    %14 = arith.maximumf %12, %13 : vector<32x256xf32>
    %c0_12 = arith.constant 0 : index
    %c0_13 = arith.constant 0 : index
    %15 = vector.load %arg6[%c0_12, %c0_13] : memref<1x32xf32, #tpu.memory_space<vmem>>, vector<1x32xf32>
    %cst_14 = arith.constant dense<0.000000e+00> : vector<1x256xf32>
    %16 = tpu.matmul %15, %14, %cst_14 {dimension_numbers = #tpu.dot_dimension_numbers<[1], [0], [0], [1], [0, 0, 1, 1], [], []>} : vector<1x32xf32>, vector<32x256xf32>, vector<1x256xf32> -> vector<1x256xf32>
    %c0_15 = arith.constant 0 : index
    %c0_16 = arith.constant 0 : index
    %17 = vector.load %arg7[%c0_15, %c0_16] : memref<1x1xf32, #tpu.memory_space<vmem>>, vector<1x1xf32>
    %18 = vector.broadcast %17 : vector<1x1xf32> to vector<1x256xf32>
    %19 = arith.addf %16, %18 : vector<1x256xf32>
    %20 = arith.negf %19 : vector<1x256xf32>
    %21 = math.exp %20 : vector<1x256xf32>
    %cst_17 = arith.constant 1.000000e+00 : f32
    %22 = vector.broadcast %cst_17 : f32 to vector<1x256xf32>
    %23 = arith.addf %22, %21 : vector<1x256xf32>
    %24 = arith.divf %22, %23 : vector<1x256xf32>
    %c0_18 = arith.constant 0 : index
    %c0_19 = arith.constant 0 : index
    %25 = vector.load %arg8[%c0_18, %c0_19] : memref<1x256xf32, #tpu.memory_space<vmem>>, vector<1x256xf32>
    tpu.vector_store %arg8[%c0_18, %c0_19], %24 {strides = array<i32>} : memref<1x256xf32, #tpu.memory_space<vmem>>, vector<1x256xf32>,
    return
  }
  func.func @transform_0(%arg0: i32) -> (i32, i32) {
    %c0_i32 = arith.constant 0 : i32
    %c0_i32_0 = arith.constant 0 : i32
    return %arg0, %c0_i32 : i32, i32
  }
  func.func @transform_1(%arg0: i32) -> (i32, i32) {
    %c0_i32 = arith.constant 0 : i32
    %c0_i32_0 = arith.constant 0 : i32
    %c0_i32_1 = arith.constant 0 : i32
    return %c0_i32, %c0_i32_0 : i32, i32
  }
  func.func @transform_2(%arg0: i32) -> (i32, i32) {
    %c0_i32 = arith.constant 0 : i32
    %c0_i32_0 = arith.constant 0 : i32
    %c0_i32_1 = arith.constant 0 : i32
    return %c0_i32, %c0_i32_0 : i32, i32
  }
  func.func @transform_3(%arg0: i32) -> (i32, i32) {
    %c0_i32 = arith.constant 0 : i32
    %c0_i32_0 = arith.constant 0 : i32
    %c0_i32_1 = arith.constant 0 : i32
    return %c0_i32, %c0_i32_0 : i32, i32
  }
  func.func @transform_4(%arg0: i32) -> (i32, i32) {
    %c0_i32 = arith.constant 0 : i32
    %c0_i32_0 = arith.constant 0 : i32
    %c0_i32_1 = arith.constant 0 : i32
    return %c0_i32, %c0_i32_0 : i32, i32
  }
  func.func @transform_5(%arg0: i32) -> (i32, i32) {
    %c0_i32 = arith.constant 0 : i32
    %c0_i32_0 = arith.constant 0 : i32
    %c0_i32_1 = arith.constant 0 : i32
    return %c0_i32, %c0_i32_0 : i32, i32
  }
  func.func @transform_6(%arg0: i32) -> (i32, i32) {
    %c0_i32 = arith.constant 0 : i32
    %c0_i32_0 = arith.constant 0 : i32
    %c0_i32_1 = arith.constant 0 : i32
    return %c0_i32, %c0_i32_0 : i32, i32
  }
  func.func @transform_7(%arg0: i32) -> (i32, i32) {
    %c0_i32 = arith.constant 0 : i32
    %c0_i32_0 = arith.constant 0 : i32
    return %c0_i32, %arg0 : i32, i32
  }
}

</mosaic_0001>

<bundles_post_ra>
// kernel: tpu_custom_call.1
= control target key start
LH: loop header
LB: loop body
LE: loop exit
PB: predicated region body
PF: predicated region fallthrough
CT: control target
= control target key end

     0   :  { %s829_s0 = inlined_call_operand.vmem [shape: f32[256,16], index: 0, kind: input, shape index: {}]   ;;  %s830_s1 = inlined_call_operand.vmem [shape: f32[32,16], index: 1, kind: input, shape index: {}]   ;;  %s831_s2 = inlined_call_operand.vmem [shape: f32[32,1], index: 2, kind: input, shape index: {}]   ;;  %s832_s3 = inlined_call_operand.vmem [shape: f32[32,32], index: 3, kind: input, shape index: {}]   ;;  %s833_s4 = inlined_call_operand.vmem [shape: f32[32,1], index: 4, kind: input, shape index: {}]   ;;  %s834_s5 = inlined_call_operand.vmem [shape: f32[1,32], index: 5, kind: input, shape index: {}]   ;;  %s835_s6 = inlined_call_operand.<no memory space> [shape: f32[1,1], index: 6, kind: input, shape index: {}]   ;;  %s836_s7 = inlined_call_operand.hbm [shape: f32[1,256], index: 7, kind: output, shape index: {}]  }
   0x1   :  { %v12_v0 = vstv %s835_s6 }
   0x2   :  { %13 = vst [vmem:[#allocation2] sm:$0x1] %v12_v0 }
   0x3   :  { %v44_v1 = vld [vmem:[%s829_s0 + $0x78] sm:$0xff]  ;;  %vm89_vm0 = vcmask 130048   ;;  %v43_v3 = vld [vmem:[%s829_s0 + $0x70] sm:$0xff]  ;;  %v42_v5 = vld [vmem:[%s829_s0 + $0x68] sm:$0xff] }
   0x4   :  { %v60_v2 = vld [vmem:[%s829_s0 + $0xf8] sm:$0xff]  ;;  %487 = vmatpush.xpose.msk.msra.mxu0 %vm89_vm0, %v44_v1  ;;  %v59_v4 = vld [vmem:[%s829_s0 + $0xf0] sm:$0xff]  ;;  %v58_v6 = vld [vmem:[%s829_s0 + $0xe8] sm:$0xff] }
   0x5   :  { %507 = vmatpush.xpose.msk.msra.mxu1 %vm89_vm0, %v60_v2 }
   0x8   :  { %488 = vmatpush.xpose.msk.msra.mxu0 %vm89_vm0, %v43_v3 }
   0x9   :  { %508 = vmatpush.xpose.msk.msra.mxu1 %vm89_vm0, %v59_v4 }
   0xa   :  { %14 = vsyncpa [#allocation4], 0  ;;  %v41_v7 = vld [vmem:[%s829_s0 + $0x60] sm:$0xff]  ;;  %v40_v9 = vld [vmem:[%s829_s0 + $0x58] sm:$0xff]  ;;  %v578_v22 = vmov 0   ;;  %vm292_vm1 = vcmask 261120  }
   0xb   :  { %v57_v8 = vld [vmem:[%s829_s0 + $0xe0] sm:$0xff]  ;;  %v56_v10 = vld [vmem:[%s829_s0 + $0xd8] sm:$0xff]  ;;  %v39_v11 = vld [vmem:[%s829_s0 + $0x50] sm:$0xff]  ;;  %542 = vset.pattern.permute.xlu1 %v578_v22  ;;  %541 = vset.pattern.permute.xlu0 %v578_v22  ;;  %s478_s25 = sshll.u32 %s836_s7, 4  ;;  %vm463_vm9 = vcmask 1040384   ;;  %s479_s25 = int_to_ptr.hbm [resolvable:$true] %s478_s25 }
   0xc   :  { %489 = vmatpush.xpose.msk.msra.mxu0 %vm89_vm0, %v42_v5  ;;  %v55_v12 = vld [vmem:[%s829_s0 + $0xd0] sm:$0xff]  ;;  %v38_v13 = vld [vmem:[%s829_s0 + $0x48] sm:$0xff]  ;;  %v37_v15 = vld [vmem:[%s829_s0 + $0x40] sm:$0xff]  ;;  %543 = vset.pattern.permute.xlu2 %v578_v22 }
   0xd   :  { %509 = vmatpush.xpose.msk.msra.mxu1 %vm89_vm0, %v58_v6  ;;  %v54_v14 = vld [vmem:[%s829_s0 + $0xc8] sm:$0xff]  ;;  %v53_v16 = vld [vmem:[%s829_s0 + $0xc0] sm:$0xff]  ;;  %v36_v17 = vld [vmem:[%s829_s0 + $0x38] sm:$0xff] }
   0xe   :  { %v52_v18 = vld [vmem:[%s829_s0 + $0xb8] sm:$0xff]  ;;  %v66_v19 = vld [vmem:[%s831_s2 + $0x8] sm:$0xff]  ;;  %v35_v20 = vld [vmem:[%s829_s0 + $0x30] sm:$0xff] }
   0xf   :  { %v51_v21 = vld [vmem:[%s829_s0 + $0xb0] sm:$0xff]  ;;  %76 = vperm.xlu1 %542, %v66_v19   ;;  %v34_v23 = vld [vmem:[%s829_s0 + $0x28] sm:$0xff]  ;;  %v65_v25 = vld [vmem:[%s831_s2] sm:$0xff] }
  0x10   :  { %490 = vmatpush.xpose.msk.msra.mxu0 %vm89_vm0, %v41_v7  ;;  %v50_v24 = vld [vmem:[%s829_s0 + $0xa8] sm:$0xff]  ;;  %v68_v26 = vld [vmem:[%s831_s2 + $0x18] sm:$0xff]  ;;  %v33_v27 = vld [vmem:[%s829_s0 + $0x20] sm:$0xff] }
  0x11   :  { %510 = vmatpush.xpose.msk.msra.mxu1 %vm89_vm0, %v57_v8  ;;  %v49_v28 = vld [vmem:[%s829_s0 + $0xa0] sm:$0xff]  ;;  %86 = vperm.xlu0 %541, %v68_v26   ;;  %v32_v29 = vld [vmem:[%s829_s0 + $0x18] sm:$0xff]  ;;  %v67_v31 = vld [vmem:[%s831_s2 + $0x10] sm:$0xff] }
  0x12   :  { %v48_v30 = vld [vmem:[%s829_s0 + $0x98] sm:$0xff]  ;;  %v31_v32 = vld [vmem:[%s829_s0 + $0x10] sm:$0xff]  ;;  %v30_v34 = vld [vmem:[%s829_s0 + $0x8] sm:$0xff] }
  0x13   :  { %v47_v33 = vld [vmem:[%s829_s0 + $0x90] sm:$0xff]  ;;  %v46_v35 = vld [vmem:[%s829_s0 + $0x88] sm:$0xff]  ;;  %v268_v37 = vld [vmem:[%s833_s4] sm:$0xff] }
  0x14   :  { %491 = vmatpush.xpose.msk.msra.mxu0 %vm89_vm0, %v40_v9  ;;  %v269_v36 = vld [vmem:[%s833_s4 + $0x8] sm:$0xff]  ;;  %v29_v38 = vld [vmem:[%s829_s0] sm:$0xff]  ;;  %v63_v42 = vld [vmem:[%s830_s1 + $0x10] sm:$0xff] }
  0x15   :  { %511 = vmatpush.xpose.msk.msra.mxu1 %vm89_vm0, %v56_v10  ;;  %v45_v39 = vld [vmem:[%s829_s0 + $0x80] sm:$0xff]  ;;  %v62_v41 = vld [vmem:[%s830_s1 + $0x8] sm:$0xff]  ;;  %v64_v43 = vld [vmem:[%s830_s1 + $0x18] sm:$0xff] }
  0x16   :  { %v61_v40 = vld [vmem:[%s830_s1] sm:$0xff]  ;;  %v271_v0 = vld [vmem:[%s833_s4 + $0x18] sm:$0xff]  ;;  %v270_v10 = vld [vmem:[%s833_s4 + $0x10] sm:$0xff] }
  0x17   :  { %71 = vperm.xlu1 %542, %v65_v25   ;;  %289 = vperm.xlu2 %543, %v271_v0   ;;  %v264_v9 = vld [vmem:[%s832_s3] sm:$0xff] }
  0x18   :  { %492 = vmatpush.xpose.msk.msra.mxu0 %vm89_vm0, %v39_v11  ;;  %v265_v11 = vld [vmem:[%s832_s3 + $0x8] sm:$0xff] }
  0x19   :  { %512 = vmatpush.xpose.msk.msra.mxu1 %vm89_vm0, %v55_v12  ;;  %81 = vperm.xlu0 %541, %v67_v31   ;;  %v372_v12 = vld [vmem:[#allocation2] sm:$0x1] }
  0x1c   :  { %493 = vmatpush.xpose.msk.msra.mxu0 %vm89_vm0, %v38_v13  ;;  %v266_v13 = vld [vmem:[%s832_s3 + $0x10] sm:$0xff] }
  0x1d   :  { %513 = vmatpush.xpose.msk.msra.mxu1 %vm89_vm0, %v54_v14  ;;  %v267_v14 = vld [vmem:[%s832_s3 + $0x18] sm:$0xff] }
  0x1f   :  { %274 = vperm.xlu1 %542, %v268_v37   ;;  %284 = vperm.xlu2 %543, %v270_v10  }
  0x20   :  { %494 = vmatpush.xpose.msk.msra.mxu0 %vm89_vm0, %v37_v15 }
  0x21   :  { %514 = vmatpush.xpose.msk.msra.mxu1 %vm89_vm0, %v53_v16  ;;  %279 = vperm.xlu0 %541, %v269_v36  }
  0x24   :  { %495 = vmatpush.xpose.msk.msra.mxu0 %vm89_vm0, %v36_v17 }
  0x25   :  { %515 = vmatpush.xpose.msk.msra.mxu1 %vm89_vm0, %v52_v18 }
  0x27   :  { %375 = vperm.xlu2 %543, %v372_v12  }
  0x28   :  { %496 = vmatpush.xpose.msk.msra.mxu0 %vm89_vm0, %v35_v20 }
  0x29   :  { %516 = vmatpush.xpose.msk.msra.mxu1 %vm89_vm0, %v51_v21 }
  0x2c   :  { %497 = vmatpush.xpose.msk.msra.mxu0 %vm89_vm0, %v34_v23 }
  0x2d   :  { %517 = vmatpush.xpose.msk.msra.mxu1 %vm89_vm0, %v50_v24 }
  0x30   :  { %498 = vmatpush.xpose.msk.msra.mxu0 %vm89_vm0, %v33_v27 }
  0x31   :  { %518 = vmatpush.xpose.msk.msra.mxu1 %vm89_vm0, %v49_v28 }
  0x34   :  { %499 = vmatpush.xpose.msk.msra.mxu0 %vm89_vm0, %v32_v29 }
  0x35   :  { %519 = vmatpush.xpose.msk.msra.mxu1 %vm89_vm0, %v48_v30 }
  0x38   :  { %500 = vmatpush.xpose.msk.msra.mxu0 %vm89_vm0, %v31_v32 }
  0x39   :  { %520 = vmatpush.xpose.msk.msra.mxu1 %vm89_vm0, %v47_v33 }
  0x3c   :  { %501 = vmatpush.xpose.msk.msra.mxu0 %vm89_vm0, %v30_v34 }
  0x3d   :  { %521 = vmatpush.xpose.msk.msra.mxu1 %vm89_vm0, %v46_v35 }
  0x40   :  { %502 = vmatpush.xpose.msk.msra.mxu0 %vm89_vm0, %v29_v38 }
  0x41   :  { %522 = vmatpush.xpose.msk.msra.mxu1 %vm89_vm0, %v45_v39 }
  0x43   :  { %503 = vmatmul.msk.f32.vlgmr.msra.gmra.mxu0 %vm89_vm0, %v61_v40 }
  0x44   :  { %523 = vmatmul.msk.f32.vlgmr.msra.gmra.mxu1 %vm89_vm0, %v61_v40 }
  0x4b   :  { %504 = vmatmul.msk.f32.gmra.mxu0 %vm89_vm0, %v62_v41 }
  0x4c   :  { %524 = vmatmul.msk.f32.gmra.mxu1 %vm89_vm0, %v62_v41 }
  0x53   :  { %505 = vmatmul.msk.f32.gmra.mxu0 %vm89_vm0, %v63_v42 }
  0x54   :  { %525 = vmatmul.msk.f32.gmra.mxu1 %vm89_vm0, %v63_v42 }
  0x5b   :  { %506 = vmatmul.msk.f32.gmra.mxu0 %vm89_vm0, %v64_v43 }
  0x5c   :  { %526 = vmatmul.msk.f32.gmra.mxu1 %vm89_vm0, %v64_v43  ;;  %v371_v43 = vld [vmem:[%s834_s5] sm:$0x1]  ;;  %s579_s5 = smov [#allocation3]  }
  0x5d   :  { %s476_s22 = sshll.u32 %s579_s5, 4  ;;  %s477_s22 = int_to_ptr.vmem [resolvable:$true] %s476_s22 }
  0x71   :  { %v290_v19 = vpop.permute.xlu2 %289 }
  0x79   :  { %v285_v22 = vpop.permute.xlu2 %284 }
  0x81   :  { %v77_v49 = vpop.permute.xlu1 %76 }
  0x83   :  { %v87_v48 = vpop.permute.xlu0 %86 }
  0x89   :  { %v72_v59 = vpop.permute.xlu1 %71 }
  0x8b   :  { %v82_v52 = vpop.permute.xlu0 %81 }
  0x91   :  { %v275_v34 = vpop.permute.xlu1 %274 }
  0x93   :  { %v280_v29 = vpop.permute.xlu0 %279 }
  0xc0   :  { %v215_v44 = vpop.f32.mrf.mxu0 }
  0xc1   :  { %v244_v45 = vpop.f32.mrf.mxu1  ;;  %v216_v1 = vadd.f32 %v215_v44, %v72_v59  ;;  %v376_v44 = vpop.permute.xlu2 %375 }
  0xc2   :  { %v245_v2 = vadd.f32 %v244_v45, %v72_v59  ;;  %v378_v45 = vperm.slane %v376_v44, 0 }
  0xc3   :  { %v256_v7 = vmax.f32 %v216_v1, 0.0 }
  0xc4   :  { %v257_v8 = vmax.f32 %v245_v2, 0.0 }
  0xc8   :  { %v218_v46 = vpop.f32.mrf.mxu0 }
  0xc9   :  { %v247_v47 = vpop.f32.mrf.mxu1  ;;  %v219_v60 = vadd.f32 %v218_v46, %v77_v49 }
  0xca   :  { %v248_v61 = vadd.f32 %v247_v47, %v77_v49 }
  0xcb   :  { %v258_v5 = vmax.f32 %v219_v60, 0.0 }
  0xcc   :  { %v259_v6 = vmax.f32 %v248_v61, 0.0 }
  0xd0   :  { %v221_v50 = vpop.f32.mrf.mxu0 }
  0xd1   :  { %v250_v51 = vpop.f32.mrf.mxu1  ;;  %v222_v55 = vadd.f32 %v221_v50, %v82_v52 }
  0xd2   :  { %v251_v56 = vadd.f32 %v250_v51, %v82_v52 }
  0xd3   :  { %v260_v3 = vmax.f32 %v222_v55, 0.0 }
  0xd4   :  { %v261_v4 = vmax.f32 %v251_v56, 0.0 }
  0xd8   :  { %v224_v53 = vpop.f32.mrf.mxu0 }
  0xd9   :  { %v253_v54 = vpop.f32.mrf.mxu1  ;;  %v225_v57 = vadd.f32 %v224_v53, %v87_v48 }
  0xda   :  { %v254_v58 = vadd.f32 %v253_v54, %v87_v48 }
  0xdb   :  { %v262_v62 = vmax.f32 %v225_v57, 0.0 }
  0xdc   :  { %v263_v63 = vmax.f32 %v254_v58, 0.0 }
  0xdd   :  { %317 = vmatpush.msra.mxu2 %v262_v62 }
  0xde   :  { %346 = vmatpush.msra.mxu3 %v263_v63 }
  0xdf   :  { %318 = vmatpush.msra.mxu2 %v260_v3 }
  0xe0   :  { %347 = vmatpush.msra.mxu3 %v261_v4 }
  0xe1   :  { %319 = vmatpush.msra.mxu2 %v258_v5 }
  0xe2   :  { %348 = vmatpush.msra.mxu3 %v259_v6 }
  0xe3   :  { %320 = vmatpush.msra.mxu2 %v256_v7  ;;  %v466_v7 = vlaneseq }
  0xe4   :  { %349 = vmatpush.msra.mxu3 %v257_v8  ;;  %527 = vmatmul.msk.f32.vlgmr.msra.gmra.mxu2 %vm292_vm1, %v264_v9 }
  0xe5   :  { %531 = vmatmul.msk.f32.vlgmr.msra.gmra.mxu3 %vm292_vm1, %v264_v9  ;;  %vm468_vm11 = vcmp.lt.s32.totalorder %v466_v7, 256 }
  0xec   :  { %528 = vmatmul.msk.f32.gmra.mxu2 %vm292_vm1, %v265_v11 }
  0xed   :  { %532 = vmatmul.msk.f32.gmra.mxu3 %vm292_vm1, %v265_v11 }
  0xf4   :  { %529 = vmatmul.msk.f32.gmra.mxu2 %vm292_vm1, %v266_v13 }
  0xf5   :  { %533 = vmatmul.msk.f32.gmra.mxu3 %vm292_vm1, %v266_v13 }
  0xfc   :  { %530 = vmatmul.msk.f32.gmra.mxu2 %vm292_vm1, %v267_v14 }
  0xfd   :  { %534 = vmatmul.msk.f32.gmra.mxu3 %vm292_vm1, %v267_v14 }
 0x167   :  { %v322_v15 = vpop.f32.mrf.mxu2 }
 0x168   :  { %v351_v16 = vpop.f32.mrf.mxu3  ;;  %v323_v35 = vadd.f32 %v322_v15, %v275_v34 }
 0x169   :  { %v352_v36 = vadd.f32 %v351_v16, %v275_v34 }
 0x16a   :  { %v363_v41 = vmax.f32 %v323_v35, 0.0 }
 0x16b   :  { %v364_v42 = vmax.f32 %v352_v36, 0.0 }
 0x16f   :  { %v325_v17 = vpop.f32.mrf.mxu2 }
 0x170   :  { %v354_v18 = vpop.f32.mrf.mxu3  ;;  %v326_v30 = vadd.f32 %v325_v17, %v280_v29 }
 0x171   :  { %v355_v31 = vadd.f32 %v354_v18, %v280_v29 }
 0x172   :  { %v365_v39 = vmax.f32 %v326_v30, 0.0 }
 0x173   :  { %v366_v40 = vmax.f32 %v355_v31, 0.0 }
 0x177   :  { %v328_v20 = vpop.f32.mrf.mxu2 }
 0x178   :  { %v357_v21 = vpop.f32.mrf.mxu3  ;;  %v329_v25 = vadd.f32 %v328_v20, %v285_v22 }
 0x179   :  { %v358_v26 = vadd.f32 %v357_v21, %v285_v22 }
 0x17a   :  { %v367_v37 = vmax.f32 %v329_v25, 0.0 }
 0x17b   :  { %v368_v38 = vmax.f32 %v358_v26, 0.0 }
 0x17f   :  { %v331_v23 = vpop.f32.mrf.mxu2 }
 0x180   :  { %v360_v24 = vpop.f32.mrf.mxu3  ;;  %v332_v27 = vadd.f32 %v331_v23, %v290_v19 }
 0x181   :  { %v361_v28 = vadd.f32 %v360_v24, %v290_v19 }
 0x182   :  { %v369_v32 = vmax.f32 %v332_v27, 0.0 }
 0x183   :  { %v370_v33 = vmax.f32 %v361_v28, 0.0 }
 0x184   :  { %394 = vmatpush.msrb.mxu2 %v369_v32 }
 0x185   :  { %414 = vmatpush.msrb.mxu3 %v370_v33 }
 0x186   :  { %395 = vmatpush.msrb.mxu2 %v367_v37 }
 0x187   :  { %415 = vmatpush.msrb.mxu3 %v368_v38 }
 0x188   :  { %396 = vmatpush.msrb.mxu2 %v365_v39 }
 0x189   :  { %416 = vmatpush.msrb.mxu3 %v366_v40 }
 0x18a   :  { %397 = vmatpush.msrb.mxu2 %v363_v41 }
 0x18b   :  { %417 = vmatpush.msrb.mxu3 %v364_v42  ;;  %535 = vmatmul.msk.f32.vlgmr.msrb.gmra.mxu2 %vm292_vm1, %v371_v43 }
 0x18c   :  { %536 = vmatmul.msk.f32.vlgmr.msrb.gmra.mxu3 %vm292_vm1, %v371_v43 }
 0x20e   :  { %v399_v46 = vpop.f32.mrf.mxu2 }
 0x20f   :  { %v419_v47 = vpop.f32.mrf.mxu3  ;;  %v400_v48 = vadd.f32 %v399_v46, %v378_v45 }
 0x210   :  { %v420_v49 = vadd.f32 %v419_v47, %v378_v45 }
 0x211   :  { %v537_v50 = vmul.f32 -1.442695, %v400_v48 }
 0x212   :  { %v538_v51 = vmul.f32 -1.442695, %v420_v49 }
 0x213   :  { %544 = vpow2.f32 %v537_v50 }
 0x214   :  { %546 = vpow2.f32 %v538_v51 }
 0x219   :  { %v545_v52 = vpop.eup %544 }
 0x21a   :  { %v547_v53 = vpop.eup %546  ;;  %v428_v54 = vadd.f32 1.0, %v545_v52 }
 0x21b   :  { %v429_v55 = vadd.f32 1.0, %v547_v53 }
 0x21c   :  { %548 = vrcp.f32 %v428_v54  ;;  %vm435_vm4 = vweird.f32 %v428_v54  ;;  %v441_v3 = vand.u32 2147483648, %v428_v54  ;;  %v439_v5 = vand.u32 2147483647, %v428_v54 }
 0x21d   :  { %550 = vrcp.f32 %v429_v55  ;;  %v456_v63 = vand.u32 2147483648, %v429_v55  ;;  %v454_v1 = vand.u32 2147483647, %v429_v55  ;;  %vm450_vm6 = vweird.f32 %v429_v55 }
 0x21e   :  { %v442_v11 = vor.u32 1.1754944e-38, %v441_v3  ;;  %vm440_vm10 = vcmp.eq.f32.partialorder %v439_v5, 8.507059e+37 }
 0x21f   :  { %v457_v8 = vor.u32 1.1754944e-38, %v456_v63  ;;  %vm455_vm8 = vcmp.eq.f32.partialorder %v454_v1, 8.507059e+37 }
 0x222   :  { %v549_v56 = vpop.eup %548 }
 0x223   :  { %v551_v57 = vpop.eup %550  ;;  %v431_v58 = vmul.f32 %v549_v56, %v428_v54  ;;  %vm436_vm2 = vweird.f32 %v549_v56 }
 0x224   :  { %v446_v59 = vmul.f32 %v551_v57, %v429_v55  ;;  %vm451_vm3 = vweird.f32 %v551_v57  ;;  %vm820_vm5 = vmor %vm435_vm4, %vm436_vm2 }
 0x225   :  { %v432_v60 = vsub.f32 1.0, %v431_v58  ;;  %vm452_vm7 = vmor %vm450_vm6, %vm451_vm3 }
 0x226   :  { %v447_v61 = vsub.f32 1.0, %v446_v59 }
 0x227   :  { %v433_v62 = vmul.f32 %v549_v56, %v432_v60 }
 0x228   :  { %v448_v0 = vmul.f32 %v551_v57, %v447_v61 }
 0x229   :  { %v434_v2 = vadd.f32 %v549_v56, %v433_v62 }
 0x22a   :  { %v449_v6 = vadd.f32 %v551_v57, %v448_v0 }
 0x22b   :  { %v438_v9 = vsel %vm820_vm5, %v549_v56, %v434_v2 }
 0x22c   :  { %v453_v10 = vsel %vm452_vm7, %v551_v57, %v449_v6  ;;  %v443_v14 = vsel %vm440_vm10, %v442_v11, %v438_v9 }
 0x22d   :  { %v458_v12 = vsel %vm455_vm8, %v457_v8, %v453_v10 }
 0x22e   :  { %v462_v13 = vrot.slane %v458_v12, 7 }
 0x230   :  { %v464_v15 = vsel %vm463_vm9, %v443_v14, %v462_v13 }
 0x231   :  { %470 = vst.msk [vmem:[#allocation3] sm:$0x3] %vm468_vm11, %v464_v15 }
 0x232   :  { %481 = dma.vmem_to_hbm [thread:$0]  %s477_s22, 32, %s479_s25, [#allocation4]  }
 0x233   :  { %576 = dma.done.wait [#allocation4], 32  }
 0x234   :  { %577 = vsyncadd [#allocation4], 4294967264 }
 0x235   :  { %486 = vsyncpa [#allocation4], 1 }

</bundles_post_ra>
